<compile_context>
chip_gen: v5e
topology: v5e:2x2
jax: 0.10.0
libtpu: 0.0.40
codegen_flags: <defaults>
</compile_context>

<pallas_src>
import functools
import math

import jax
import jax.numpy as jnp
from jax.experimental import pallas as pl
from jax.experimental.pallas import tpu as pltpu


# Safe on v5e/v6e (128 MiB physical VMEM) and v7x (64 MiB physical).
_VMEM_LIMIT = 48 * 1024 * 1024


def _round_up(x, m):
    return ((x + m - 1) // m) * m


def _choose_tile(dim, max_tile, align):
    """Pick (tile, padded_dim) for one dimension (max_tile % align == 0)."""
    if dim >= max_tile:
        return max_tile, _round_up(dim, max_tile)
    t = _round_up(dim, align)
    return t, t


# ---------------------------------------------------------------------------
# Kernel 1: tiled linear  y[m, n] = (sum_k x[m, k] * W[n, k] + b[n]) * mask[m]
# ---------------------------------------------------------------------------
def _linear_kernel(x_ref, w_ref, b_ref, m_ref, o_ref, acc_ref):
    # x: (tm, tk)  w: (tn, tk)  b: (1, tn)  m: (tm, 1)  o: (tm, tn)
    k = pl.program_id(2)

    @pl.when(k == 0)
    def _():
        acc_ref[...] = jnp.zeros_like(acc_ref)

    # Transposed contraction: contract last dim of both operands (x @ W.T)
    # so the (N, K) weight never needs a wrapper-side transpose in HBM.
    acc_ref[...] += jax.lax.dot_general(
        x_ref[...], w_ref[...],
        dimension_numbers=(((1,), (1,)), ((), ())),
        preferred_element_type=jnp.float32)

    @pl.when(k == pl.num_programs(2) - 1)
    def _():
        o_ref[...] = ((acc_ref[...] + b_ref[...]) * m_ref[...]).astype(o_ref.dtype)


def _linear_rowmask(x2d, weight, bias, row_mask, *,
                    tm_max=256, tn_max=512, tk_max=512):
    """x2d: (M, K), weight: (N, K), bias: (N,), row_mask: (M,) -> (M, N)."""
    M, K = x2d.shape
    N = weight.shape[0]

    tm, Mp = _choose_tile(M, tm_max, 8)
    tk, Kp = _choose_tile(K, tk_max, 128)
    tn, Np = _choose_tile(N, tn_max, 128)

    xp = jnp.pad(x2d, ((0, Mp - M), (0, Kp - K)))
    wp = jnp.pad(weight, ((0, Np - N), (0, Kp - K)))
    bp = jnp.pad(bias, (0, Np - N)).reshape(1, Np)
    mp = jnp.pad(row_mask.astype(x2d.dtype), (0, Mp - M)).reshape(Mp, 1)

    out = pl.pallas_call(
        _linear_kernel,
        out_shape=jax.ShapeDtypeStruct((Mp, Np), x2d.dtype),
        grid_spec=pltpu.PrefetchScalarGridSpec(
            num_scalar_prefetch=0,
            grid=(Mp // tm, Np // tn, Kp // tk),
            in_specs=[
                pl.BlockSpec((tm, tk), lambda i, j, k: (i, k)),
                pl.BlockSpec((tn, tk), lambda i, j, k: (j, k)),
                pl.BlockSpec((1, tn), lambda i, j, k: (0, j)),
                pl.BlockSpec((tm, 1), lambda i, j, k: (i, 0)),
            ],
            out_specs=pl.BlockSpec((tm, tn), lambda i, j, k: (i, j)),
            scratch_shapes=[pltpu.VMEM((tm, tn), jnp.float32)],
        ),
        compiler_params=pltpu.CompilerParams(
            dimension_semantics=("parallel", "parallel", "arbitrary"),
            vmem_limit_bytes=_VMEM_LIMIT),
    )(xp, wp, bp, mp)
    return out[:M, :N]


# ---------------------------------------------------------------------------
# Kernel 2: per-(batch, head, q-tile) attention with additive penalty mask.
# ---------------------------------------------------------------------------
def _attn_kernel(q_ref, k_ref, v_ref, amask_ref, o_ref, *, scale):
    # q: (tq, Dk)  k: (Skv, Dk)  v: (Skv, Dv)  amask: (tq, Skv)  o: (tq, Dv)
    s = jax.lax.dot_general(
        q_ref[...], k_ref[...],
        dimension_numbers=(((1,), (1,)), ((), ())),
        preferred_element_type=jnp.float32) * scale
    s = s - amask_ref[...]
    m = jnp.max(s, axis=-1, keepdims=True)
    p = jnp.exp(s - m)
    denom = jnp.sum(p, axis=-1, keepdims=True)
    p = p / denom
    o = jnp.dot(p.astype(v_ref.dtype), v_ref[...],
                preferred_element_type=jnp.float32)
    o_ref[...] = o.astype(o_ref.dtype)


def _attention(qw4, kw4, vw4, a_mask, scale, *, tq_max=256):
    # TODO(synk): for very long KV sequences, tile Skv with an online-softmax
    # (flash) variant; here KV fits in one VMEM block per (batch, head).
    B, H, Sq, Dk = qw4.shape
    Skv, Dv = vw4.shape[2], vw4.shape[3]

    tq, Sqp = _choose_tile(Sq, tq_max, 8)
    if Sqp > Sq:
        qw4 = jnp.pad(qw4, ((0, 0), (0, 0), (0, Sqp - Sq), (0, 0)))
        a_mask = jnp.pad(a_mask, ((0, 0), (0, Sqp - Sq), (0, 0)))

    out = pl.pallas_call(
        functools.partial(_attn_kernel, scale=scale),
        out_shape=jax.ShapeDtypeStruct((B, H, Sqp, Dv), qw4.dtype),
        grid_spec=pltpu.PrefetchScalarGridSpec(
            num_scalar_prefetch=0,
            grid=(B, H, Sqp // tq),
            in_specs=[
                pl.BlockSpec((None, None, tq, Dk),
                             lambda b, h, qi: (b, h, qi, 0)),
                pl.BlockSpec((None, None, Skv, Dk),
                             lambda b, h, qi: (b, h, 0, 0)),
                pl.BlockSpec((None, None, Skv, Dv),
                             lambda b, h, qi: (b, h, 0, 0)),
                pl.BlockSpec((None, tq, Skv),
                             lambda b, h, qi: (b, qi, 0)),
            ],
            out_specs=pl.BlockSpec((None, None, tq, Dv),
                                   lambda b, h, qi: (b, h, qi, 0)),
        ),
        compiler_params=pltpu.CompilerParams(
            dimension_semantics=("parallel", "parallel", "parallel"),
            vmem_limit_bytes=_VMEM_LIMIT),
    )(qw4, kw4, vw4, a_mask)
    return out[:, :, :Sq, :]


# ---------------------------------------------------------------------------
# Full forward pass (matches MultiHeaderAttention.forward).
# ---------------------------------------------------------------------------
def multi_header_attention_forward(inputs, q_mask, kv_mask, a_mask, params, *,
                                   heads, out_size, key_size):
    q, k, v = inputs
    B, Sq, iS = q.shape
    Skv = k.shape[1]
    out_dim = heads * out_size

    # Q/K/V projections with the row (padding) mask fused into the finalize.
    qw = _linear_rowmask(q.reshape(B * Sq, iS), params["wq"], params["bq"],
                         q_mask.reshape(B * Sq))
    kw = _linear_rowmask(k.reshape(B * Skv, iS), params["wk"], params["bk"],
                         kv_mask.reshape(B * Skv))
    vw = _linear_rowmask(v.reshape(B * Skv, iS), params["wv"], params["bv"],
                         kv_mask.reshape(B * Skv))

    # Split heads: (B, S, H*D) -> (B, H, S, D). Small activation transposes;
    # the large weight tensors are never transposed in HBM.
    qw4 = qw.reshape(B, Sq, heads, key_size).transpose(0, 2, 1, 3)
    kw4 = kw.reshape(B, Skv, heads, key_size).transpose(0, 2, 1, 3)
    vw4 = vw.reshape(B, Skv, heads, out_size).transpose(0, 2, 1, 3)

    ctx = _attention(qw4, kw4, vw4, a_mask, 1.0 / math.sqrt(key_size))

    # Merge heads: (B, H, Sq, Dv) -> (B*Sq, H*Dv).
    ctx2 = ctx.transpose(0, 2, 1, 3).reshape(B * Sq, out_dim)

    # Output projection; original module multiplies by kv_mask here
    # (it implicitly assumes Sq == Skv).
    o = _linear_rowmask(ctx2, params["wo"], params["bo"],
                        kv_mask.reshape(B * Skv))
    return o.reshape(B, Sq, out_dim)


# ---------------------------------------------------------------------------
# Pure-JAX reference (mirrors the PyTorch forward exactly).
# ---------------------------------------------------------------------------
def _reference(inputs, q_mask, kv_mask, a_mask, params, *,
               heads, out_size, key_size):
    q, k, v = inputs
    B, Sq, _ = q.shape
    Skv = k.shape[1]
    qw = (q @ params["wq"].T + params["bq"]) * q_mask[:, :, None]
    kw = (k @ params["wk"].T + params["bk"]) * kv_mask[:, :, None]
    vw = (v @ params["wv"].T + params["bv"]) * kv_mask[:, :, None]
    qw = qw.reshape(B, Sq, heads, key_size).transpose(0, 2, 1, 3)
    kw = kw.reshape(B, Skv, heads, key_size).transpose(0, 2, 1, 3)
    vw = vw.reshape(B, Skv, heads, out_size).transpose(0, 2, 1, 3)
    a = jnp.einsum("bhqk,bhvk->bhqv", qw, kw) / math.sqrt(key_size)
    a = a - a_mask[:, None, :, :]
    a = jax.nn.softmax(a, axis=-1)
    o = jnp.einsum("bhqv,bhvo->bhqo", a, vw)
    o = o.transpose(0, 2, 1, 3).reshape(B, Sq, heads * out_size)
    o = (o @ params["wo"].T + params["bo"]) * kv_mask[:, :, None]
    return o


if __name__ == "__main__":
    # Small shapes consistent with the module.
    B, S, iS = 2, 8, 32
    heads, key_size, out_size = 4, 8, 8
    out_dim = heads * out_size

    key = jax.random.PRNGKey(0)
    keys = jax.random.split(key, 11)

    def _linear_init(kw_, kb_, n_out, n_in):
        bound = 1.0 / math.sqrt(n_in)
        w = jax.random.uniform(kw_, (n_out, n_in), jnp.float32, -bound, bound)
        b = jax.random.uniform(kb_, (n_out,), jnp.float32, -bound, bound)
        return w, b

    wq, bq = _linear_init(keys[0], keys[1], heads * key_size, iS)
    wk, bk = _linear_init(keys[2], keys[3], heads * key_size, iS)
    wv, bv = _linear_init(keys[4], keys[5], out_dim, iS)
    wo, bo = _linear_init(keys[6], keys[7], out_dim, out_dim)
    params = dict(wq=wq, bq=bq, wk=wk, bk=bk, wv=wv, bv=bv, wo=wo, bo=bo)

    q = jax.random.normal(keys[8], (B, S, iS), jnp.float32)
    k = jax.random.normal(keys[9], (B, S, iS), jnp.float32)
    v = jax.random.normal(keys[10], (B, S, iS), jnp.float32)

    # Padding masks (1 = real token, 0 = pad), deterministic.
    pos = jnp.arange(S)
    q_mask = (pos[None, :] < jnp.array([S - 3, S - 1])[:, None]).astype(jnp.float32)
    kv_mask = (pos[None, :] < jnp.array([S - 2, S])[:, None]).astype(jnp.float32)
    # Additive attention penalty mask (big value on padded kv positions).
    a_mask = jnp.broadcast_to((1.0 - kv_mask)[:, None, :] * 1e9, (B, S, S))

    out = multi_header_attention_forward(
        (q, k, v), q_mask, kv_mask, a_mask, params,
        heads=heads, out_size=out_size, key_size=key_size)
    out = jax.block_until_ready(out)

    ref = _reference((q, k, v), q_mask, kv_mask, a_mask, params,
                     heads=heads, out_size=out_size, key_size=key_size)

    assert out.shape == (B, S, out_dim)
    err = float(jnp.max(jnp.abs(out - ref)))
    assert jnp.allclose(out, ref, atol=1e-3, rtol=1e-3), err

    print("KERNEL_OK")
</pallas_src>

<mosaic_0001>
module attributes {stable_mosaic.version = 11 : i64} {
  func.func @_linear_kernel(%arg0: i32, %arg1: i32, %arg2: i32, %arg3: memref<16x128xf32, #tpu.memory_space<vmem>>, %arg4: memref<128x128xf32, #tpu.memory_space<vmem>>, %arg5: memref<1x128xf32, #tpu.memory_space<vmem>>, %arg6: memref<16x1xf32, #tpu.memory_space<vmem>>, %arg7: memref<16x128xf32, #tpu.memory_space<vmem>>, %arg8: memref<16x128xf32, #tpu.memory_space<vmem>>) attributes {dimension_semantics = [#tpu.dimension_semantics<parallel>, #tpu.dimension_semantics<parallel>, #tpu.dimension_semantics<arbitrary>], iteration_bounds = array<i64: 1, 1, 1>, scalar_prefetch = 0 : i64, scratch_operands = 1 : i64, tpu.core_type = #tpu.core_type<tc>, window_params = [{transform_indices = @transform_0, window_bounds = array<i64: 16, 128>}, {transform_indices = @transform_1, window_bounds = array<i64: 128, 128>}, {transform_indices = @transform_2, window_bounds = array<i64: 1, 128>}, {transform_indices = @transform_3, window_bounds = array<i64: 16, 1>}, {transform_indices = @transform_4, window_bounds = array<i64: 16, 128>}]} {
    %c0_i32 = arith.constant 0 : i32
    %0 = arith.cmpi eq, %arg2, %c0_i32 : i32
    %1 = arith.extui %0 : i1 to i32
    %c0_i32_0 = arith.constant 0 : i32
    %2 = arith.cmpi ne, %1, %c0_i32_0 : i32
    scf.if %2 {
      %cst_10 = arith.constant 0.000000e+00 : f32
      %12 = vector.broadcast %cst_10 : f32 to vector<16x128xf32>
      %c0_11 = arith.constant 0 : index
      %c0_12 = arith.constant 0 : index
      %13 = vector.load %arg8[%c0_11, %c0_12] : memref<16x128xf32, #tpu.memory_space<vmem>>, vector<16x128xf32>
      tpu.vector_store %arg8[%c0_11, %c0_12], %12 {strides = array<i32>} : memref<16x128xf32, #tpu.memory_space<vmem>>, vector<16x128xf32>,
    } else {
    }
    %c0 = arith.constant 0 : index
    %c0_1 = arith.constant 0 : index
    %3 = vector.load %arg8[%c0, %c0_1] : memref<16x128xf32, #tpu.memory_space<vmem>>, vector<16x128xf32>
    %c0_2 = arith.constant 0 : index
    %c0_3 = arith.constant 0 : index
    %4 = vector.load %arg3[%c0_2, %c0_3] : memref<16x128xf32, #tpu.memory_space<vmem>>, vector<16x128xf32>
    %c0_4 = arith.constant 0 : index
    %c0_5 = arith.constant 0 : index
    %5 = vector.load %arg4[%c0_4, %c0_5] : memref<128x128xf32, #tpu.memory_space<vmem>>, vector<128x128xf32>
    %cst = arith.constant dense<0.000000e+00> : vector<16x128xf32>
    %6 = tpu.matmul %4, %5, %cst {dimension_numbers = #tpu.dot_dimension_numbers<[1], [1], [0], [0], [0, 0, 1, 0], [], []>} : vector<16x128xf32>, vector<128x128xf32>, vector<16x128xf32> -> vector<16x128xf32>
    %7 = arith.addf %3, %6 : vector<16x128xf32>
    %c0_6 = arith.constant 0 : index
    %c0_7 = arith.constant 0 : index
    %8 = vector.load %arg8[%c0_6, %c0_7] : memref<16x128xf32, #tpu.memory_space<vmem>>, vector<16x128xf32>
    tpu.vector_store %arg8[%c0_6, %c0_7], %7 {strides = array<i32>} : memref<16x128xf32, #tpu.memory_space<vmem>>, vector<16x128xf32>,
    %c0_i32_8 = arith.constant 0 : i32
    %9 = arith.cmpi eq, %arg2, %c0_i32_8 : i32
    %10 = arith.extui %9 : i1 to i32
    %c0_i32_9 = arith.constant 0 : i32
    %11 = arith.cmpi ne, %10, %c0_i32_9 : i32
    scf.if %11 {
      %c0_10 = arith.constant 0 : index
      %c0_11 = arith.constant 0 : index
      %12 = vector.load %arg8[%c0_10, %c0_11] : memref<16x128xf32, #tpu.memory_space<vmem>>, vector<16x128xf32>
      %c0_12 = arith.constant 0 : index
      %c0_13 = arith.constant 0 : index
      %13 = vector.load %arg5[%c0_12, %c0_13] : memref<1x128xf32, #tpu.memory_space<vmem>>, vector<1x128xf32>
      %14 = vector.broadcast %13 : vector<1x128xf32> to vector<16x128xf32>
      %15 = arith.addf %12, %14 : vector<16x128xf32>
      %c0_14 = arith.constant 0 : index
      %c0_15 = arith.constant 0 : index
      %16 = vector.load %arg6[%c0_14, %c0_15] : memref<16x1xf32, #tpu.memory_space<vmem>>, vector<16x1xf32>
      %17 = vector.broadcast %16 : vector<16x1xf32> to vector<16x128xf32>
      %18 = arith.mulf %15, %17 : vector<16x128xf32>
      %c0_16 = arith.constant 0 : index
      %c0_17 = arith.constant 0 : index
      %19 = vector.load %arg7[%c0_16, %c0_17] : memref<16x128xf32, #tpu.memory_space<vmem>>, vector<16x128xf32>
      tpu.vector_store %arg7[%c0_16, %c0_17], %18 {strides = array<i32>} : memref<16x128xf32, #tpu.memory_space<vmem>>, vector<16x128xf32>,
    } else {
    }
    return
  }
  func.func @transform_0(%arg0: i32, %arg1: i32, %arg2: i32) -> (i32, i32) {
    %c0_i32 = arith.constant 0 : i32
    return %arg0, %arg2 : i32, i32
  }
  func.func @transform_1(%arg0: i32, %arg1: i32, %arg2: i32) -> (i32, i32) {
    %c0_i32 = arith.constant 0 : i32
    return %arg1, %arg2 : i32, i32
  }
  func.func @transform_2(%arg0: i32, %arg1: i32, %arg2: i32) -> (i32, i32) {
    %c0_i32 = arith.constant 0 : i32
    %c0_i32_0 = arith.constant 0 : i32
    return %c0_i32, %arg1 : i32, i32
  }
  func.func @transform_3(%arg0: i32, %arg1: i32, %arg2: i32) -> (i32, i32) {
    %c0_i32 = arith.constant 0 : i32
    %c0_i32_0 = arith.constant 0 : i32
    return %arg0, %c0_i32 : i32, i32
  }
  func.func @transform_4(%arg0: i32, %arg1: i32, %arg2: i32) -> (i32, i32) {
    %c0_i32 = arith.constant 0 : i32
    return %arg0, %arg1 : i32, i32
  }
}

</mosaic_0001>

<bundles_post_ra>
// kernel: tpu_custom_call.1
= control target key start
LH: loop header
LB: loop body
LE: loop exit
PB: predicated region body
PF: predicated region fallthrough
CT: control target
= control target key end

     0   :  { %9 = vsyncpa [#allocation4], 0  ;;  %s265_s0 = inlined_call_operand.vmem [shape: f32[16,128], index: 0, kind: input, shape index: {}]   ;;  %s266_s1 = inlined_call_operand.hbm [shape: f32[128,128], index: 1, kind: input, shape index: {}]   ;;  %s267_s2 = inlined_call_operand.vmem [shape: f32[1,128], index: 2, kind: input, shape index: {}]   ;;  %s268_s3 = inlined_call_operand.vmem [shape: f32[16,1], index: 3, kind: input, shape index: {}]   ;;  %s269_s4 = inlined_call_operand.hbm [shape: f32[16,128], index: 4, kind: output, shape index: {}]  }
   0x1   :  { %10 = vsyncpa [#allocation5], 0  ;;  %s17_s17 = sshll.u32 %s266_s1, 4  ;;  %s208_s18 = smov [#allocation3]   ;;  %s18_s17 = int_to_ptr.hbm [resolvable:$true] %s17_s17 }
   0x2   :  { %s19_s19 = sshll.u32 %s208_s18, 4  ;;  %s209_s20 = smov 128   ;;  %s20_s19 = int_to_ptr.vmem [resolvable:$true] %s19_s19 }
   0x3   :  { %s210_s21 = smov 8  }
   0x4   :  { %25 = dma.hbm_to_vmem [thread:$0]  %s18_s17, 2048, %s20_s19, [#allocation4], %s209_s20, %s209_s20, %s210_s21  }
   0x5   :  { %204 = dma.done.wait [#allocation4], 2048  }
   0x6   :  { %205 = vsyncadd [#allocation4], 4294965248  ;;  %v59_v0 = vld [vmem:[#allocation3 + $0x78] sm:$0xff]  ;;  %v58_v1 = vld [vmem:[#allocation3 + $0x70] sm:$0xff]  ;;  %v211_v9 = vmov 0   ;;  %s212_s30 = smov [#allocation6]  }
   0x7   :  { %60 = vmatpush.xpose.msra.mxu0 %v59_v0  ;;  %133 = vmatpush.xpose.msra.mxu1 %v59_v0  ;;  %v57_v2 = vld [vmem:[#allocation3 + $0x68] sm:$0xff]  ;;  %v56_v3 = vld [vmem:[#allocation3 + $0x60] sm:$0xff]  ;;  %v55_v4 = vld [vmem:[#allocation3 + $0x58] sm:$0xff]  ;;  %s118_s5 = sshll.u32 %s212_s30, 4  ;;  %s120_s8 = sshll.u32 %s269_s4, 4  ;;  %s119_s5 = int_to_ptr.vmem [resolvable:$true] %s118_s5  ;;  %s121_s8 = int_to_ptr.hbm [resolvable:$true] %s120_s8 }
   0x8   :  { %v54_v5 = vld [vmem:[#allocation3 + $0x50] sm:$0xff]  ;;  %v53_v6 = vld [vmem:[#allocation3 + $0x48] sm:$0xff]  ;;  %v98_v7 = vld [vmem:[%s268_s3] sm:$0xff]  ;;  %154 = vset.pattern.permute.xlu0 %v211_v9 }
   0x9   :  { %v52_v8 = vld [vmem:[#allocation3 + $0x40] sm:$0xff]  ;;  %102 = vperm.xlu0 %154, %v98_v7   ;;  %v51_v10 = vld [vmem:[#allocation3 + $0x38] sm:$0xff]  ;;  %v99_v11 = vld [vmem:[%s268_s3 + $0x8] sm:$0xff] }
   0xa   :  { %v50_v12 = vld [vmem:[#allocation3 + $0x30] sm:$0xff]  ;;  %v49_v13 = vld [vmem:[#allocation3 + $0x28] sm:$0xff]  ;;  %v48_v14 = vld [vmem:[#allocation3 + $0x20] sm:$0xff] }
   0xb   :  { %61 = vmatpush.xpose.msra.mxu0 %v58_v1  ;;  %134 = vmatpush.xpose.msra.mxu1 %v58_v1  ;;  %v47_v15 = vld [vmem:[#allocation3 + $0x18] sm:$0xff]  ;;  %v46_v16 = vld [vmem:[#allocation3 + $0x10] sm:$0xff]  ;;  %v45_v17 = vld [vmem:[#allocation3 + $0x8] sm:$0xff] }
   0xc   :  { %v44_v18 = vld [vmem:[#allocation3] sm:$0xff]  ;;  %v43_v20 = vld [vmem:[%s265_s0 + $0x8] sm:$0xff] }
   0xd   :  { %v42_v19 = vld [vmem:[%s265_s0] sm:$0xff] }
   0xe   :  { %v155_v22 = vld [vmem:[%s267_s2] ss:$0 sm:$0xff] }
   0xf   :  { %62 = vmatpush.xpose.msra.mxu0 %v57_v2  ;;  %135 = vmatpush.xpose.msra.mxu1 %v57_v2 }
  0x11   :  { %107 = vperm.xlu0 %154, %v99_v11  }
  0x13   :  { %63 = vmatpush.xpose.msra.mxu0 %v56_v3  ;;  %136 = vmatpush.xpose.msra.mxu1 %v56_v3 }
  0x17   :  { %64 = vmatpush.xpose.msra.mxu0 %v55_v4  ;;  %137 = vmatpush.xpose.msra.mxu1 %v55_v4 }
  0x1b   :  { %65 = vmatpush.xpose.msra.mxu0 %v54_v5  ;;  %138 = vmatpush.xpose.msra.mxu1 %v54_v5 }
  0x1f   :  { %66 = vmatpush.xpose.msra.mxu0 %v53_v6  ;;  %139 = vmatpush.xpose.msra.mxu1 %v53_v6 }
  0x23   :  { %67 = vmatpush.xpose.msra.mxu0 %v52_v8  ;;  %140 = vmatpush.xpose.msra.mxu1 %v52_v8 }
  0x27   :  { %68 = vmatpush.xpose.msra.mxu0 %v51_v10  ;;  %141 = vmatpush.xpose.msra.mxu1 %v51_v10 }
  0x2b   :  { %69 = vmatpush.xpose.msra.mxu0 %v50_v12  ;;  %142 = vmatpush.xpose.msra.mxu1 %v50_v12 }
  0x2f   :  { %70 = vmatpush.xpose.msra.mxu0 %v49_v13  ;;  %143 = vmatpush.xpose.msra.mxu1 %v49_v13 }
  0x33   :  { %71 = vmatpush.xpose.msra.mxu0 %v48_v14  ;;  %144 = vmatpush.xpose.msra.mxu1 %v48_v14 }
  0x37   :  { %72 = vmatpush.xpose.msra.mxu0 %v47_v15  ;;  %145 = vmatpush.xpose.msra.mxu1 %v47_v15 }
  0x3b   :  { %73 = vmatpush.xpose.msra.mxu0 %v46_v16  ;;  %146 = vmatpush.xpose.msra.mxu1 %v46_v16 }
  0x3f   :  { %74 = vmatpush.xpose.msra.mxu0 %v45_v17  ;;  %147 = vmatpush.xpose.msra.mxu1 %v45_v17 }
  0x43   :  { %75 = vmatpush.xpose.msra.mxu0 %v44_v18  ;;  %148 = vmatpush.xpose.msra.mxu1 %v44_v18 }
  0x46   :  { %76 = vmatmul.f32.vlgmr.msra.gmra.mxu0 %v42_v19  ;;  %79 = vmatmul.f32.vlgmr.msra.gmra.mxu1 %v43_v20 }
  0x7b   :  { %v103_v21 = vpop.permute.xlu0 %102 }
  0x83   :  { %v108_v27 = vpop.permute.xlu0 %107 }
  0xc3   :  { %v77_v23 = vpop.f32.mrf.mxu0  ;;  %v80_v24 = vpop.f32.mrf.mxu1 }
  0xc4   :  { %v96_v25 = vadd.f32 %v155_v22, %v77_v23  ;;  %v97_v26 = vadd.f32 %v155_v22, %v80_v24 }
  0xc6   :  { %v110_v28 = vmul.f32 %v103_v21, %v96_v25  ;;  %v111_v29 = vmul.f32 %v108_v27, %v97_v26 }
  0xc8   :  { %112 = vst [vmem:[#allocation6] sm:$0xff] %v110_v28 }
  0xc9   :  { %113 = vst [vmem:[#allocation6 + $0x8] sm:$0xff] %v111_v29 }
  0xca   :  { %126 = dma.vmem_to_hbm [thread:$0]  %s119_s5, 256, %s121_s8, [#allocation5], %s209_s20, %s209_s20, %s210_s21  }
  0xcb   :  { %206 = dma.done.wait [#allocation5], 256  }
  0xcc   :  { %207 = vsyncadd [#allocation5], 4294967040 }
  0xcd   :  { %131 = vsyncpa [#allocation4], 1 }
  0xce   :  { %132 = vsyncpa [#allocation5], 1 }

</bundles_post_ra>
